<compile_context>
chip_gen: v7x
topology: tpu7x:2x2x1
jax: 0.10.0
libtpu: 0.0.40
codegen_flags: <defaults>
</compile_context>

<pallas_src>
import jax
import jax.numpy as jnp
from jax.experimental import pallas as pl
from jax.experimental.pallas import tpu as pltpu


def _round_up(n: int, m: int) -> int:
    return (n + m - 1) // m * m


# ----------------------------------------------------------------------------
# Kernel: one grid step = one Q-net applied to one batch tile (full 3-layer MLP).
# ----------------------------------------------------------------------------
def _critic_kernel(sa_ref, w1_ref, b1_ref, w2_ref, b2_ref, w3_ref, b3_ref,
                   out_ref):
    sa = sa_ref[...].astype(jnp.bfloat16)                       # (TB, D)

    # Layer 1 — single merged matmul (state|action concatenated in the wrapper).
    h1 = jnp.dot(sa, w1_ref[...], preferred_element_type=jnp.float32)
    h1 = jnp.maximum(h1 + b1_ref[...], 0.0)                     # (TB, H1P) f32

    # Layer 2.
    h2 = jnp.dot(h1.astype(jnp.bfloat16), w2_ref[...],
                 preferred_element_type=jnp.float32)
    h2 = jnp.maximum(h2 + b2_ref[...], 0.0)                     # (TB, H2P) f32

    # Head (fan_out = 1): keep it off the MXU — a (H2,1) matmul would use
    # 1/128..1/256 of the MXU columns.  VPU multiply + XLU lane-reduce instead.
    w3 = w3_ref[...].astype(jnp.float32)                        # (1, H2P)
    q = jnp.sum(h2 * w3, axis=-1, keepdims=True) + b3_ref[...]  # (TB, 1)
    out_ref[...] = q.astype(out_ref.dtype)


# ----------------------------------------------------------------------------
# Wrapper.
# ----------------------------------------------------------------------------
def critic_forward(state, action, kparams, *, batch_tile=512):
    """Pallas forward for the Critic.

    Args:
      state:   (B, state_dim)  f32
      action:  (B, action_dim) f32
      kparams: kernel-ready params (see `prepare_kernel_params`):
        w1 (Q, D, H1P) bf16, b1 (Q, 1, H1P) f32,
        w2 (Q, H1P, H2P) bf16, b2 (Q, 1, H2P) f32,
        w3 (Q, 1, H2P) bf16 (transposed head), b3 (Q, 1, 1) f32.
    Returns:
      tuple of Q arrays, each (B, 1) — matches the PyTorch tuple output.
    """
    B = state.shape[0]
    Q, D, H1P = kparams["w1"].shape
    H2P = kparams["w2"].shape[2]
    assert D == state.shape[1] + action.shape[1]

    # sa = torch.cat([state, action], dim=1): one tiny wrapper op; lets layer 1
    # be a single MXU matmul per net.
    sa = jnp.concatenate([state, action], axis=1).astype(jnp.float32)

    tb = B if B <= batch_tile else batch_tile
    nbt = pl.cdiv(B, tb)
    grid = (Q, nbt)  # Q outer so weights stay resident across batch tiles.

    in_specs = [
        pl.BlockSpec((tb, D), lambda q, b: (b, 0)),               # sa
        pl.BlockSpec((None, D, H1P), lambda q, b: (q, 0, 0)),     # w1
        pl.BlockSpec((None, 1, H1P), lambda q, b: (q, 0, 0)),     # b1
        pl.BlockSpec((None, H1P, H2P), lambda q, b: (q, 0, 0)),   # w2
        pl.BlockSpec((None, 1, H2P), lambda q, b: (q, 0, 0)),     # b2
        pl.BlockSpec((None, 1, H2P), lambda q, b: (q, 0, 0)),     # w3 (row)
        pl.BlockSpec((None, 1, 1), lambda q, b: (q, 0, 0)),       # b3
    ]
    out_specs = pl.BlockSpec((None, tb, 1), lambda q, b: (q, b, 0))

    flops = Q * 2 * B * (D * H1P + H1P * H2P + H2P)
    bytes_accessed = (int(sa.size) * 4
                      + sum(int(v.size) * v.dtype.itemsize
                            for v in kparams.values())
                      + B * Q * 4)

    q_all = pl.pallas_call(
        _critic_kernel,
        out_shape=jax.ShapeDtypeStruct((Q, B, 1), jnp.float32),
        grid_spec=pltpu.PrefetchScalarGridSpec(
            num_scalar_prefetch=0,
            grid=grid,
            in_specs=in_specs,
            out_specs=out_specs),
        compiler_params=pltpu.CompilerParams(
            dimension_semantics=("parallel", "parallel")),
        cost_estimate=pl.CostEstimate(
            flops=flops, transcendentals=0, bytes_accessed=bytes_accessed),
    )(sa, kparams["w1"], kparams["b1"], kparams["w2"], kparams["b2"],
      kparams["w3"], kparams["b3"])

    # Split the (Q, B, 1) slab back into the module's tuple of (B, 1).
    return tuple(q_all[i] for i in range(Q))


# ----------------------------------------------------------------------------
# Parameter construction / preparation.
# ----------------------------------------------------------------------------
def init_critic_params(key, state_dim, action_dim, net_arch=(400, 300),
                       num_q_nets=2):
    """PyTorch nn.Linear-style init, stacked over the Q-net axis (f32)."""
    dims = [state_dim + action_dim] + list(net_arch) + [1]
    params = {}
    names = [("w1", "b1"), ("w2", "b2"), ("w3", "b3")]
    assert len(dims) - 1 == len(names)
    for li, (wn, bn) in enumerate(names):
        fan_in, fan_out = dims[li], dims[li + 1]
        bound = 1.0 / jnp.sqrt(jnp.float32(fan_in))
        key, kw, kb = jax.random.split(key, 3)
        params[wn] = jax.random.uniform(
            kw, (num_q_nets, fan_in, fan_out), jnp.float32, -bound, bound)
        params[bn] = jax.random.uniform(
            kb, (num_q_nets, 1, fan_out), jnp.float32, -bound, bound)
    return params


def prepare_kernel_params(params):
    """One-time conversion to kernel layout.

    * Zero-pads hidden widths to multiples of 128 (e.g. (400,300) -> (512,384)):
      pads W1/b1 output cols, W2 input rows + output cols, b2, and W3 input
      rows — numerically exact.
    * Casts weights to bf16 (halves dominant HBM traffic), keeps biases f32.
    * Stores the head weight as a (Q, 1, H2P) row so the kernel can compute the
      head as a VPU multiply + lane reduce instead of an N=1 MXU matmul.
    """
    Q, D, H1 = params["w1"].shape
    H2 = params["w2"].shape[2]
    H1P = _round_up(H1, 128)
    H2P = _round_up(H2, 128)

    def pad_last(x, target):
        pad = target - x.shape[-1]
        if pad == 0:
            return x
        widths = [(0, 0)] * (x.ndim - 1) + [(0, pad)]
        return jnp.pad(x, widths)

    w1 = pad_last(params["w1"], H1P)                              # (Q, D, H1P)
    b1 = pad_last(params["b1"], H1P)                              # (Q, 1, H1P)
    w2 = pad_last(params["w2"], H2P)                              # (Q, H1, H2P)
    w2 = jnp.pad(w2, ((0, 0), (0, H1P - H1), (0, 0)))             # (Q, H1P, H2P)
    b2 = pad_last(params["b2"], H2P)                              # (Q, 1, H2P)
    w3 = pad_last(jnp.swapaxes(params["w3"], 1, 2), H2P)          # (Q, 1, H2P)
    b3 = params["b3"]                                             # (Q, 1, 1)

    return {
        "w1": w1.astype(jnp.bfloat16),
        "b1": b1.astype(jnp.float32),
        "w2": w2.astype(jnp.bfloat16),
        "b2": b2.astype(jnp.float32),
        "w3": w3.astype(jnp.bfloat16),
        "b3": b3.astype(jnp.float32),
    }


# Pure-JAX f32 reference for correctness checking.
def critic_forward_ref(state, action, params):
    sa = jnp.concatenate([state, action], axis=1)
    outs = []
    Q = params["w1"].shape[0]
    for q in range(Q):
        h = jnp.maximum(sa @ params["w1"][q] + params["b1"][q], 0.0)
        h = jnp.maximum(h @ params["w2"][q] + params["b2"][q], 0.0)
        outs.append(h @ params["w3"][q] + params["b3"][q])
    return tuple(outs)


if __name__ == "__main__":
    # Small batch, default (non-lane-aligned) architecture (400, 300) so the
    # padding path is exercised.
    B, STATE_DIM, ACTION_DIM = 8, 24, 8
    NET_ARCH = (400, 300)
    NUM_Q = 2

    key = jax.random.PRNGKey(0)
    key, ks, ka, kp = jax.random.split(key, 4)
    state = jax.random.normal(ks, (B, STATE_DIM), jnp.float32)
    action = jax.random.normal(ka, (B, ACTION_DIM), jnp.float32)

    params = init_critic_params(kp, STATE_DIM, ACTION_DIM, NET_ARCH, NUM_Q)
    kparams = prepare_kernel_params(params)

    q_vals = critic_forward(state, action, kparams)
    q_vals = jax.block_until_ready(q_vals)

    # bf16 weight streaming => compare against the f32 reference with a
    # correspondingly relaxed tolerance.
    q_ref = critic_forward_ref(state, action, params)
    for got, want in zip(q_vals, q_ref):
        assert got.shape == (B, 1)
        assert jnp.allclose(got, want, atol=5e-2, rtol=5e-2), "mismatch vs ref"

    print("KERNEL_OK")
</pallas_src>

<mosaic_0001>
module attributes {stable_mosaic.version = 11 : i64} {
  func.func @_critic_kernel(%arg0: i32, %arg1: i32, %arg2: memref<8x32xf32, #tpu.memory_space<vmem>>, %arg3: memref<1x32x512xbf16, #tpu.memory_space<vmem>>, %arg4: memref<1x1x512xf32, #tpu.memory_space<vmem>>, %arg5: memref<1x512x384xbf16, #tpu.memory_space<vmem>>, %arg6: memref<1x1x384xf32, #tpu.memory_space<vmem>>, %arg7: memref<1x1x384xbf16, #tpu.memory_space<vmem>>, %arg8: memref<1x1x1xf32, #tpu.memory_space<vmem>>, %arg9: memref<1x8x1xf32, #tpu.memory_space<vmem>>) attributes {dimension_semantics = [#tpu.dimension_semantics<parallel>, #tpu.dimension_semantics<parallel>], iteration_bounds = array<i64: 2, 1>, scalar_prefetch = 0 : i64, scratch_operands = 0 : i64, tpu.core_type = #tpu.core_type<tc>, window_params = [{transform_indices = @transform_0, window_bounds = array<i64: 8, 32>}, {transform_indices = @transform_1, window_bounds = array<i64: 1, 32, 512>}, {transform_indices = @transform_2, window_bounds = array<i64: 1, 1, 512>}, {transform_indices = @transform_3, window_bounds = array<i64: 1, 512, 384>}, {transform_indices = @transform_4, window_bounds = array<i64: 1, 1, 384>}, {transform_indices = @transform_5, window_bounds = array<i64: 1, 1, 384>}, {transform_indices = @transform_6, window_bounds = array<i64: 1, 1, 1>}, {transform_indices = @transform_7, window_bounds = array<i64: 1, 8, 1>}]} {
    %c0 = arith.constant 0 : index
    %c0_0 = arith.constant 0 : index
    %0 = vector.load %arg2[%c0, %c0_0] : memref<8x32xf32, #tpu.memory_space<vmem>>, vector<8x32xf32>
    %1 = arith.truncf %0 : vector<8x32xf32> to vector<8x32xbf16>
    %c0_1 = arith.constant 0 : index
    %c0_2 = arith.constant 0 : index
    %c0_3 = arith.constant 0 : index
    %2 = vector.load %arg3[%c0_1, %c0_2, %c0_3] : memref<1x32x512xbf16, #tpu.memory_space<vmem>>, vector<1x32x512xbf16>
    %3 = vector.shape_cast %2 : vector<1x32x512xbf16> to vector<32x512xbf16>
    %cst = arith.constant dense<0.000000e+00> : vector<8x512xf32>
    %4 = tpu.matmul %1, %3, %cst {dimension_numbers = #tpu.dot_dimension_numbers<[1], [0], [0], [1], [0, 0, 1, 1], [], []>} : vector<8x32xbf16>, vector<32x512xbf16>, vector<8x512xf32> -> vector<8x512xf32>
    %c0_4 = arith.constant 0 : index
    %c0_5 = arith.constant 0 : index
    %c0_6 = arith.constant 0 : index
    %5 = vector.load %arg4[%c0_4, %c0_5, %c0_6] : memref<1x1x512xf32, #tpu.memory_space<vmem>>, vector<1x1x512xf32>
    %6 = vector.shape_cast %5 : vector<1x1x512xf32> to vector<1x512xf32>
    %7 = vector.broadcast %6 : vector<1x512xf32> to vector<8x512xf32>
    %8 = arith.addf %4, %7 : vector<8x512xf32>
    %cst_7 = arith.constant 0.000000e+00 : f32
    %9 = vector.broadcast %cst_7 : f32 to vector<8x512xf32>
    %10 = arith.maximumf %8, %9 : vector<8x512xf32>
    %11 = arith.truncf %10 : vector<8x512xf32> to vector<8x512xbf16>
    %c0_8 = arith.constant 0 : index
    %c0_9 = arith.constant 0 : index
    %c0_10 = arith.constant 0 : index
    %12 = vector.load %arg5[%c0_8, %c0_9, %c0_10] : memref<1x512x384xbf16, #tpu.memory_space<vmem>>, vector<1x512x384xbf16>
    %13 = vector.shape_cast %12 : vector<1x512x384xbf16> to vector<512x384xbf16>
    %cst_11 = arith.constant dense<0.000000e+00> : vector<8x384xf32>
    %14 = tpu.matmul %11, %13, %cst_11 {dimension_numbers = #tpu.dot_dimension_numbers<[1], [0], [0], [1], [0, 0, 1, 1], [], []>} : vector<8x512xbf16>, vector<512x384xbf16>, vector<8x384xf32> -> vector<8x384xf32>
    %c0_12 = arith.constant 0 : index
    %c0_13 = arith.constant 0 : index
    %c0_14 = arith.constant 0 : index
    %15 = vector.load %arg6[%c0_12, %c0_13, %c0_14] : memref<1x1x384xf32, #tpu.memory_space<vmem>>, vector<1x1x384xf32>
    %16 = vector.shape_cast %15 : vector<1x1x384xf32> to vector<1x384xf32>
    %17 = vector.broadcast %16 : vector<1x384xf32> to vector<8x384xf32>
    %18 = arith.addf %14, %17 : vector<8x384xf32>
    %cst_15 = arith.constant 0.000000e+00 : f32
    %19 = vector.broadcast %cst_15 : f32 to vector<8x384xf32>
    %20 = arith.maximumf %18, %19 : vector<8x384xf32>
    %c0_16 = arith.constant 0 : index
    %c0_17 = arith.constant 0 : index
    %c0_18 = arith.constant 0 : index
    %21 = vector.load %arg7[%c0_16, %c0_17, %c0_18] : memref<1x1x384xbf16, #tpu.memory_space<vmem>>, vector<1x1x384xbf16>
    %22 = vector.shape_cast %21 : vector<1x1x384xbf16> to vector<1x384xbf16>
    %23 = arith.extf %22 : vector<1x384xbf16> to vector<1x384xf32>
    %24 = vector.broadcast %23 : vector<1x384xf32> to vector<8x384xf32>
    %25 = arith.mulf %20, %24 : vector<8x384xf32>
    %cst_19 = arith.constant dense<0.000000e+00> : vector<8xf32>
    %26 = vector.multi_reduction <add>, %25, %cst_19 [1] : vector<8x384xf32> to vector<8xf32>
    %27 = vector.shape_cast %26 : vector<8xf32> to vector<8x1xf32>
    %c0_20 = arith.constant 0 : index
    %c0_21 = arith.constant 0 : index
    %c0_22 = arith.constant 0 : index
    %28 = vector.load %arg8[%c0_20, %c0_21, %c0_22] : memref<1x1x1xf32, #tpu.memory_space<vmem>>, vector<1x1x1xf32>
    %29 = vector.shape_cast %28 : vector<1x1x1xf32> to vector<1x1xf32>
    %30 = vector.broadcast %29 : vector<1x1xf32> to vector<8x1xf32>
    %31 = arith.addf %27, %30 : vector<8x1xf32>
    %c0_23 = arith.constant 0 : index
    %c0_24 = arith.constant 0 : index
    %c0_25 = arith.constant 0 : index
    %32 = vector.load %arg9[%c0_23, %c0_24, %c0_25] : memref<1x8x1xf32, #tpu.memory_space<vmem>>, vector<1x8x1xf32>
    %33 = vector.shape_cast %32 : vector<1x8x1xf32> to vector<8x1xf32>
    %34 = vector.shape_cast %31 : vector<8x1xf32> to vector<1x8x1xf32>
    tpu.vector_store %arg9[%c0_23, %c0_24, %c0_25], %34 {strides = array<i32>} : memref<1x8x1xf32, #tpu.memory_space<vmem>>, vector<1x8x1xf32>,
    return
  }
  func.func @transform_0(%arg0: i32, %arg1: i32) -> (i32, i32) {
    %c0_i32 = arith.constant 0 : i32
    %c0_i32_0 = arith.constant 0 : i32
    return %arg1, %c0_i32 : i32, i32
  }
  func.func @transform_1(%arg0: i32, %arg1: i32) -> (i32, i32, i32) {
    %c0_i32 = arith.constant 0 : i32
    %c0_i32_0 = arith.constant 0 : i32
    %c0_i32_1 = arith.constant 0 : i32
    return %arg0, %c0_i32, %c0_i32_0 : i32, i32, i32
  }
  func.func @transform_2(%arg0: i32, %arg1: i32) -> (i32, i32, i32) {
    %c0_i32 = arith.constant 0 : i32
    %c0_i32_0 = arith.constant 0 : i32
    %c0_i32_1 = arith.constant 0 : i32
    return %arg0, %c0_i32, %c0_i32_0 : i32, i32, i32
  }
  func.func @transform_3(%arg0: i32, %arg1: i32) -> (i32, i32, i32) {
    %c0_i32 = arith.constant 0 : i32
    %c0_i32_0 = arith.constant 0 : i32
    %c0_i32_1 = arith.constant 0 : i32
    return %arg0, %c0_i32, %c0_i32_0 : i32, i32, i32
  }
  func.func @transform_4(%arg0: i32, %arg1: i32) -> (i32, i32, i32) {
    %c0_i32 = arith.constant 0 : i32
    %c0_i32_0 = arith.constant 0 : i32
    %c0_i32_1 = arith.constant 0 : i32
    return %arg0, %c0_i32, %c0_i32_0 : i32, i32, i32
  }
  func.func @transform_5(%arg0: i32, %arg1: i32) -> (i32, i32, i32) {
    %c0_i32 = arith.constant 0 : i32
    %c0_i32_0 = arith.constant 0 : i32
    %c0_i32_1 = arith.constant 0 : i32
    return %arg0, %c0_i32, %c0_i32_0 : i32, i32, i32
  }
  func.func @transform_6(%arg0: i32, %arg1: i32) -> (i32, i32, i32) {
    %c0_i32 = arith.constant 0 : i32
    %c0_i32_0 = arith.constant 0 : i32
    %c0_i32_1 = arith.constant 0 : i32
    return %arg0, %c0_i32, %c0_i32_0 : i32, i32, i32
  }
  func.func @transform_7(%arg0: i32, %arg1: i32) -> (i32, i32, i32) {
    %c0_i32 = arith.constant 0 : i32
    %c0_i32_0 = arith.constant 0 : i32
    return %arg0, %arg1, %c0_i32 : i32, i32, i32
  }
}

</mosaic_0001>

<bundles_post_ra>
// kernel: tpu_custom_call.1
= control target key start
LH: loop header
LB: loop body
LE: loop exit
PB: predicated region body
PF: predicated region fallthrough
CT: control target
= control target key end

     0   :  { %12 = vsyncpa [#allocation3], 0  ;;  %s2519_s0 = inlined_call_operand.vmem [shape: f32[8,32], index: 0, kind: input, shape index: {}]   ;;  %s2520_s1 = inlined_call_operand.hbm [shape: bf16[2,32,512], index: 1, kind: input, shape index: {}]   ;;  %s2521_s2 = inlined_call_operand.vmem [shape: f32[2,1,512], index: 2, kind: input, shape index: {}]   ;;  %s2522_s3 = inlined_call_operand.hbm [shape: bf16[2,512,384], index: 3, kind: input, shape index: {}]   ;;  %s2523_s4 = inlined_call_operand.vmem [shape: f32[2,1,384], index: 4, kind: input, shape index: {}]   ;;  %s2524_s5 = inlined_call_operand.vmem [shape: bf16[2,1,384], index: 5, kind: input, shape index: {}]   ;;  %s2525_s6 = inlined_call_operand.vmem [shape: f32[2,1,1], index: 6, kind: input, shape index: {}]   ;;  %s2526_s7 = inlined_call_operand.vmem [shape: f32[2,8,1], index: 7, kind: output, shape index: {}]  }
   0x1   :  { %14 = vsyncpa [#allocation3 + $0x1], 0 }
   0x2   :  { %15 = vsyncpa [#allocation5], 0 }
   0x3   :  { %17 = vsyncpa [#allocation5 + $0x1], 0  ;;  %s2186_s24 = smov 0   ;;  %s2188_s25 = smov 0  }
   0x4   :  { %s2190_s26 = smov 0   ;;  %s2192_s27 = smov 0  }
   0x5   :  { %s2194_s28 = smov 0   ;;  %s2196_s29 = smov 0  }
   0x6 LB: > { %s1641_s30 = sadd.s32 4294967295, %s2137_s29   ;;  %s35_s8 = sadd.s32 1, %s2133_s28  ;;  %s2137_s29 = sphi %s2196_s29, %s23_s29   ;;  %s2133_s28 = sphi %s2194_s28, %s2537_s28   ;;  %s2129_s27 = sphi %s2192_s27, %s2536_s27   ;;  %s2125_s26 = sphi %s2190_s26, %s2535_s26   ;;  %s2121_s25 = sphi %s2188_s25, %s2534_s25   ;;  %s2117_s24 = sphi %s2186_s24, %s2533_s24  }
   0x7   : > { %p37_p0 = scmp.ge.s32.totalorder %s35_s8, 2  ;;  %s68_s9 = sadd.s32 1, %s2125_s26 }
   0x8   : > { %p75_p1 = scmp.ne.s32.totalorder %s2125_s26, %s2121_s25  ;;  %p76_p2 = scmp.eq.s32.totalorder %s2137_s29, 0 }
   0x9   : > { %s2539_s8 = smov (%p37_p0, %s35_s8), 0  ;;  %p81_p4 = scmp.ne.s32.totalorder %s2121_s25, %s2117_s24 }
   0xa   : > { %p2222_p3 = por %p76_p2, %p75_p1  ;;  %s65_s11 = ssub.s32 %s2133_s28, %s2539_s8 }
   0xb   : > { %p82_p5 = scmp.eq.s32.totalorder %s1641_s30, 0  ;;  %p66_p6 = scmp.eq.s32.totalorder %s65_s11, 0 }
   0xc   : > { %p1829_p8 = scmp.lt.s32.totalorder %s2137_s29, 2  ;;  %s2238_s14 = sand.u32 1, %s2125_s26  }
   0xd   : > { %p2229_p7 = por %p82_p5, %p81_p4  ;;  %s1763_s15 = sshll.u32 %s2133_s28, 10 }
   0xe   : > { %s2235_s13 = scalar_select %p66_p6, %s2125_s26, %s68_s9  }
   0xf   : > { %s2529_s12 = scalar_select %p2229_p7, 1, 0 }
  0x10   : > { %s1646_s16 = sshll.u32 %s2238_s14, 6  ;;  %s2245_s19 = scalar_lea.hbm %s2520_s1, %s1763_s15 }
  0x11   : > { %s274_s20 = scalar_lea.vmem [#allocation2], %s1646_s16  ;;  %p2249_p9 = pnand %p1829_p8, %p2222_p3 }
  0x12   : > { %s281_s21 = sshll.u32 %s274_s20, 4  ;;  %s271_s23 = scalar_lea.sflag [#allocation3], %s2238_s14  ;;  %s2253_s21 = int_to_ptr.vmem [resolvable:$true] %s281_s21 }
  0x13   : > { %s2023_s24 = scalar_lea.hbm %s2245_s19, 1024  ;;  %p2025_p11 = pneg %p2249_p9 }
  0x14   : > { %p2024_p10 = scmp.ne.s32.totalorder %s2245_s19, %s2023_s24  ;;  %s2028_s10 = scalar_lea.hbm %s2520_s1, 2048 }
  0x15   : > { %p2029_p0 = scmp.lt.u32.totalorder %s2245_s19, %s2520_s1  ;;  %p2030_p1 = scmp.lt.u32.totalorder %s2028_s10, %s2023_s24 }
  0x16   : > { %p2026_p12 = pnand %p2025_p11, %p2024_p10  ;;  %p2032_p3 = scmp.lt.u32.totalorder %s2023_s24, %s2245_s19 }
  0x17   : > { %p2031_p2 = por %p2030_p1, %p2029_p0 }
  0x18   : > { %p2027_p13 = pneg %p2026_p12 }
  0x19   : > { %p2033_p4 = por %p2032_p3, %p2031_p2 }
  0x1b   : > { %p2034_p5 = pnand %p2033_p4, %p2027_p13 }
  0x1d   : > { %2037 = shalt.err (!%p2034_p5)
}
  0x1e   : > { %s2038_s16 = scalar_lea.vmem %s2253_s21, 1024  ;;  %s2139_s17 = smov [#allocation2]  }
  0x1f   : > { %p2039_p6 = scmp.ne.s32.totalorder %s2253_s21, %s2038_s16  ;;  %s2043_s18 = sshll.u32 %s2139_s17, 4  ;;  %s2044_s18 = int_to_ptr.vmem [resolvable:$false] %s2043_s18 }
  0x20   : > { %s2045_s20 = scalar_lea.vmem %s2044_s18, 2048  ;;  %p2046_p12 = scmp.lt.s32.totalorder %s2253_s21, %s2044_s18 }
  0x21   : > { %p2041_p8 = pnand %p2039_p6, %p2025_p11  ;;  %p2047_p0 = scmp.lt.s32.totalorder %s2045_s20, %s2038_s16 }
  0x23   : > { %p2042_p10 = pneg %p2041_p8  ;;  %p2048_p1 = por %p2047_p0, %p2046_p12 }
  0x25   : > { %p2049_p2 = pnand %p2048_p1, %p2042_p10 }
  0x27   : > { %2052 = shalt.err (!%p2049_p2)
}
  0x28   : > { %s2140_s24 = smov 256   ;;  %s2141_s30 = smov 16  }
  0x29   : > { %1825 = dma.hbm_to_vmem [thread:$0]  (!%p2249_p9), %s2245_s19, 1024, %s2253_s21, %s271_s23, %s2140_s24, %s2140_s24, %s2141_s30  }
  0x2a   : > { %p1650_p13 = scmp.ge.s32.totalorder %s2137_s29, 1  ;;  %p337_p3 = scmp.lt.s32.totalorder %s2137_s29, 3 }
  0x2b   : > { %s1814_s9 = smul.u32 768, %s2238_s14  ;;  %s299_s19 = scalar_lea.sflag [#allocation5], %s2238_s14 }
  0x2c   : > { %p2286_p4 = pnand %p1650_p13, %p337_p3  ;;  %s1815_s11 = smul.u32 12288, %s2133_s28 }
  0x2d   : > { %s302_s18 = scalar_lea.vmem [#allocation4], %s1814_s9  ;;  %s2058_s30 = scalar_lea.hbm %s2522_s3, 24576 }
  0x2e   : > { %s2294_s17 = scalar_lea.hbm %s2522_s3, %s1815_s11  ;;  %s309_s20 = sshll.u32 %s302_s18, 4  ;;  %s2296_s20 = int_to_ptr.vmem [resolvable:$true] %s309_s20 }
  0x2f   : > { %s2053_s21 = scalar_lea.hbm %s2294_s17, 12288  ;;  %p2059_p10 = scmp.lt.u32.totalorder %s2294_s17, %s2522_s3 }
  0x30   : > { %p2054_p5 = scmp.ne.s32.totalorder %s2294_s17, %s2053_s21  ;;  %p2060_p12 = scmp.lt.u32.totalorder %s2058_s30, %s2053_s21 }
  0x31   : > { %p2062_p1 = scmp.lt.u32.totalorder %s2053_s21, %s2294_s17 }
  0x32   : > { %p2056_p6 = pnand %p2054_p5, %p2025_p11  ;;  %p2061_p0 = por %p2060_p12, %p2059_p10 }
  0x34   : > { %p2057_p8 = pneg %p2056_p6  ;;  %p2063_p2 = por %p2062_p1, %p2061_p0 }
  0x36   : > { %p2064_p13 = pnand %p2063_p2, %p2057_p8 }
  0x38   : > { %2067 = shalt.err (!%p2064_p13)
}
  0x39   : > { %s2068_s9 = scalar_lea.vmem %s2296_s20, 12288  ;;  %s2142_s16 = smov [#allocation4]  }
  0x3a   : > { %p2069_p3 = scmp.ne.s32.totalorder %s2296_s20, %s2068_s9  ;;  %s2073_s18 = sshll.u32 %s2142_s16, 4  ;;  %s2074_s18 = int_to_ptr.vmem [resolvable:$false] %s2073_s18 }
  0x3b   : > { %s2075_s23 = scalar_lea.vmem %s2074_s18, 24576  ;;  %p2076_p7 = scmp.lt.s32.totalorder %s2296_s20, %s2074_s18 }
  0x3c   : > { %p2071_p5 = pnand %p2069_p3, %p2025_p11  ;;  %p2077_p10 = scmp.lt.s32.totalorder %s2075_s23, %s2068_s9 }
  0x3e   : > { %p2072_p6 = pneg %p2071_p5  ;;  %p2078_p12 = por %p2077_p10, %p2076_p7 }
  0x40   : > { %p2079_p0 = pnand %p2078_p12, %p2072_p6 }
  0x42   : > { %2082 = shalt.err (!%p2079_p0)
}
  0x43   : > { %s2143_s21 = smov 192   ;;  %s2144_s24 = smov 12  }
  0x44   : > { %1828 = dma.hbm_to_vmem [thread:$0]  (!%p2249_p9), %s2294_s17, 12288, %s2296_s20, %s299_s19, %s2143_s21, %s2143_s21, %s2144_s24  }
  0x45   : > { %341 = sbr.rel (%p2286_p4) target bundleno = 742 (0x2e6), region = 48  ;;  %s343_s30 = sand.u32 (!%p2286_p4), 1, %s2121_s25  }
  0x46   : > { %s1651_s11 = sshll.u32 (!%p2286_p4), %s343_s30, 6  ;;  %s344_s15 = scalar_lea.sflag (!%p2286_p4), [#allocation3], %s343_s30 }
  0x47   : > { %s2327_s9 = scalar_lea.vmem (!%p2286_p4), [#allocation2], %s1651_s11  ;;  %p2532_p7 = scmp.ne.s32.totalorder (!%p2286_p4), %s2529_s12, 0 }
  0x4c   : > { %2108 = dma.done.wait (%p2532_p7), %s344_s15, 1024  }
  0x4d   : > { %2110 = vsyncadd (%p2532_p7), %s344_s15, 4294966272  ;;  %s1816_s16 = smul.u32 768, %s343_s30  ;;  %s353_s22 = scalar_lea.sflag [#allocation5], %s343_s30 }
  0x4f   : > { %s2333_s14 = scalar_lea.vmem [#allocation4], %s1816_s16 }
  0x50   : > { %2112 = dma.done.wait (%p2532_p7), %s353_s22, 12288  }
  0x51   : > { %2114 = vsyncadd (%p2532_p7), %s353_s22, 4294955008  ;;  %v2145_v0 = vmov 0   ;;  %v1883_v1 = vld [vmem:[%s2327_s9 + $0x4] ss:$16 sps:$4 sm:$0xff]   ;;  %v1885_v2 = vld [vmem:[%s2327_s9] ss:$16 sps:$4 sm:$0xff]   ;;  %v452_v61 = vlaneseq }
  0x52   : > { %548 = vmatprep.mubr.bf16.mxu1 %v2145_v0  ;;  %516 = vmatprep.subr.bf16.mxu1 %v1883_v1  ;;  %v1886_v3 = vld [vmem:[%s2327_s9 + $0x24] ss:$16 sps:$4 sm:$0xff]   ;;  %v1888_v4 = vld [vmem:[%s2327_s9 + $0x20] ss:$16 sps:$4 sm:$0xff]   ;;  %v1891_v6 = vld [vmem:[%s2327_s9 + $0xc] ss:$16 sps:$4 sm:$0xff]  }
  0x53   : > { %517 = vmatpush1.bf16.msra.mxu1 %v1885_v2  ;;  %v440_v5 = vld [vmem:[%s2519_s0] sm:$0xff]  ;;  %v1889_v7 = vld [vmem:[%s2327_s9 + $0x8] ss:$16 sps:$4 sm:$0xff]   ;;  %vm512_vm0 = vcmask 261120   ;;  %v1894_v12 = vld [vmem:[%s2327_s9 + $0x2c] ss:$16 sps:$4 sm:$0xff]  }
  0x54   : > { %518 = vmatprep.subr.bf16.mxu1 %v1886_v3  ;;  %v441_v8 = vpack.c.bf16 %v440_v5, %v440_v5  ;;  %v1895_v9 = vld [vmem:[%s2333_s14 + $0x4] ss:$12 sps:$4 sm:$0xff]   ;;  %v1897_v10 = vld [vmem:[%s2333_s14] ss:$12 sps:$4 sm:$0xff]   ;;  %v1898_v11 = vld [vmem:[%s2333_s14 + $0x1c] ss:$12 sps:$4 sm:$0xff]  }
  0x55   : > { %1263 = vmatprep.subr.bf16.mxu0 %v1895_v9  ;;  %v1900_v13 = vld [vmem:[%s2333_s14 + $0x18] ss:$12 sps:$4 sm:$0xff]   ;;  %v1901_v14 = vld [vmem:[%s2333_s14 + $0x34] ss:$12 sps:$4 sm:$0xff]   ;;  %v1903_v16 = vld [vmem:[%s2333_s14 + $0x30] ss:$12 sps:$4 sm:$0xff]  }
  0x56   : > { %1264 = vmatpush1.bf16.msra.mxu0 %v1897_v10  ;;  %v1892_v15 = vld [vmem:[%s2327_s9 + $0x28] ss:$16 sps:$4 sm:$0xff]   ;;  %v1907_v19 = vld [vmem:[%s2333_s14 + $0x64] ss:$12 sps:$4 sm:$0xff]   ;;  %v1909_v22 = vld [vmem:[%s2333_s14 + $0x60] ss:$12 sps:$4 sm:$0xff]  }
  0x57   : > { %519 = vmatpush1.bf16.msra.mxu1 %v1888_v4  ;;  %1265 = vmatprep.subr.bf16.mxu0 %v1898_v11  ;;  %v1904_v17 = vld [vmem:[%s2333_s14 + $0x4c] ss:$12 sps:$4 sm:$0xff]   ;;  %v1906_v18 = vld [vmem:[%s2333_s14 + $0x48] ss:$12 sps:$4 sm:$0xff]   ;;  %v1915_v30 = vld [vmem:[%s2333_s14 + $0x90] ss:$12 sps:$4 sm:$0xff]  }
  0x58   : > { %557 = vmatprep.subr.bf16.mxu1 %v1891_v6  ;;  %v1921_v20 = vld [vmem:[%s2333_s14 + $0xc8] ss:$12 sps:$4 sm:$0xff]   ;;  %v1926_v24 = vld [vmem:[%s2333_s14 + $0xe0] ss:$12 sps:$4 sm:$0xff]   ;;  %v1912_v26 = vld [vmem:[%s2333_s14 + $0x78] ss:$12 sps:$4 sm:$0xff]  }
  0x59   : > { %v1923_v21 = vld [vmem:[%s2333_s14 + $0x8] ss:$12 sps:$4 sm:$0xff]   ;;  %v1928_v25 = vld [vmem:[%s2333_s14 + $0x20] ss:$12 sps:$4 sm:$0xff]   ;;  %v1931_v27 = vld [vmem:[%s2333_s14 + $0xf8] ss:$12 sps:$4 sm:$0xff]  }
  0x5a   : > { %1662 = vmatmul.mubr.msk.bf16.vlgmr.msra.gmra.mrb[0].mxu1 %vm512_vm0, %v441_v8  ;;  %1266 = vmatpush1.bf16.msra.mxu0 %v1900_v13  ;;  %v1910_v23 = vld [vmem:[%s2333_s14 + $0x7c] ss:$12 sps:$4 sm:$0xff]   ;;  %v1913_v28 = vld [vmem:[%s2333_s14 + $0x94] ss:$12 sps:$4 sm:$0xff]   ;;  %v1933_v29 = vld [vmem:[%s2333_s14 + $0x38] ss:$12 sps:$4 sm:$0xff]  }
  0x5b   : > { %558 = vmatpush1.bf16.msra.mxu1 %v1889_v7  ;;  %589 = vmatprep.mubr.bf16.mxu1 %v2145_v0  ;;  %v1936_v31 = vld [vmem:[%s2333_s14 + $0x110] ss:$12 sps:$4 sm:$0xff]   ;;  %v1916_v33 = vld [vmem:[%s2333_s14 + $0xac] ss:$12 sps:$4 sm:$0xff]   ;;  %v1918_v34 = vld [vmem:[%s2333_s14 + $0xa8] ss:$12 sps:$4 sm:$0xff]  }
  0x5c   : > { %559 = vmatprep.subr.bf16.mxu1 %v1894_v12  ;;  %1267 = vmatprep.subr.bf16.mxu0 %v1901_v14  ;;  %v1938_v32 = vld [vmem:[%s2333_s14 + $0x50] ss:$12 sps:$4 sm:$0xff]   ;;  %v1941_v35 = vld [vmem:[%s2333_s14 + $0x128] ss:$12 sps:$4 sm:$0xff]   ;;  %v1946_v38 = vld [vmem:[%s2333_s14 + $0x140] ss:$12 sps:$4 sm:$0xff]  }
  0x5d   : > { %v1919_v36 = vld [vmem:[%s2333_s14 + $0xc4] ss:$12 sps:$4 sm:$0xff]   ;;  %v1943_v37 = vld [vmem:[%s2333_s14 + $0x68] ss:$12 sps:$4 sm:$0xff]   ;;  %v1922_v39 = vld [vmem:[%s2333_s14 + $0xc0] ss:$12 sps:$4 sm:$0xff]  }
  0x5e   : > { %1268 = vmatpush1.bf16.msra.mxu0 %v1903_v16  ;;  %v1924_v40 = vld [vmem:[%s2333_s14 + $0xdc] ss:$12 sps:$4 sm:$0xff]   ;;  %v1948_v41 = vld [vmem:[%s2333_s14 + $0x80] ss:$12 sps:$4 sm:$0xff]   ;;  %v1927_v42 = vld [vmem:[%s2333_s14 + $0xd8] ss:$12 sps:$4 sm:$0xff]  }
  0x5f   : > { %560 = vmatpush1.bf16.msra.mxu1 %v1892_v15  ;;  %1269 = vmatprep.subr.bf16.mxu0 %v1904_v17  ;;  %v1929_v43 = vld [vmem:[%s2333_s14 + $0xf4] ss:$12 sps:$4 sm:$0xff]   ;;  %v1932_v44 = vld [vmem:[%s2333_s14 + $0xf0] ss:$12 sps:$4 sm:$0xff]   ;;  %v1934_v45 = vld [vmem:[%s2333_s14 + $0x10c] ss:$12 sps:$4 sm:$0xff]  }
  0x60   : > { %1764 = vmatprep.subr.bf16.mxu1 %v1921_v20  ;;  %v1937_v46 = vld [vmem:[%s2333_s14 + $0x108] ss:$12 sps:$4 sm:$0xff]   ;;  %v1939_v47 = vld [vmem:[%s2333_s14 + $0x124] ss:$12 sps:$4 sm:$0xff]   ;;  %v1942_v48 = vld [vmem:[%s2333_s14 + $0x120] ss:$12 sps:$4 sm:$0xff]  }
  0x61   : > { %v1944_v49 = vld [vmem:[%s2333_s14 + $0x13c] ss:$12 sps:$4 sm:$0xff]   ;;  %v1947_v50 = vld [vmem:[%s2333_s14 + $0x138] ss:$12 sps:$4 sm:$0xff]   ;;  %v1949_v51 = vld [vmem:[%s2333_s14 + $0x154] ss:$12 sps:$4 sm:$0xff]  }
  0x62   : > { %1663 = vmatmul.mubr.msk.bf16.vlgmr.msra.gmra.mrb[4].mxu1 %vm512_vm0, %v441_v8  ;;  %1270 = vmatpush1.bf16.msra.mxu0 %v1906_v18  ;;  %v1951_v52 = vld [vmem:[%s2333_s14 + $0x158] ss:$12 sps:$4 sm:$0xff]   ;;  %v1952_v53 = vld [vmem:[%s2333_s14 + $0x150] ss:$12 sps:$4 sm:$0xff]   ;;  %v1957_v57 = vld [vmem:[%s2333_s14 + $0x168] ss:$12 sps:$4 sm:$0xff]  }
  0x63   : > { %1765 = vmatpush3.bf16.msra.mxu1 %v1923_v21  ;;  %1271 = vmatprep.subr.bf16.mxu0 %v1907_v19  ;;  %v1953_v54 = vld [vmem:[%s2333_s14 + $0x98] ss:$12 sps:$4 sm:$0xff]   ;;  %v1956_v56 = vld [vmem:[%s2333_s14 + $0x170] ss:$12 sps:$4 sm:$0xff]   ;;  %v1962_v60 = vld [vmem:[%s2333_s14 + $0x248] ss:$12 sps:$4 sm:$0xff]  }
  0x64   : > { %1766 = vmatprep.subr.bf16.mxu1 %v1926_v24  ;;  %v1954_v55 = vld [vmem:[%s2333_s14 + $0x16c] ss:$12 sps:$4 sm:$0xff]   ;;  %v1958_v58 = vld [vmem:[%s2333_s14 + $0xb0] ss:$12 sps:$4 sm:$0xff]   ;;  %p417_p9 = scmp.lt.s32.totalorder %s2129_s27, 1  ;;  %v2407_v62 = vshrl.u32 %v452_v61, 7 }
  0x65   : > { %v1961_v59 = vld [vmem:[%s2333_s14 + $0x184] ss:$12 sps:$4 sm:$0xff]   ;;  %v1959_v14 = vld [vmem:[%s2333_s14 + $0x180] ss:$12 sps:$4 sm:$0xff]   ;;  %v1963_v15 = vld [vmem:[%s2333_s14 + $0x188] ss:$12 sps:$4 sm:$0xff]  }
  0x66   : > { %1272 = vmatpush1.bf16.msra.mxu0 %v1909_v22  ;;  %s2541_s27 = smov (!%p417_p9, %s2129_s27), 1  ;;  %v2413_v63 = vsub.s32 0, %v2407_v62  ;;  %v458_v1 = vsub.s32 1, %v2407_v62  ;;  %v466_v9 = vsub.s32 3, %v2407_v62  ;;  %v1966_v18 = vld [vmem:[%s2333_s14 + $0x19c] ss:$12 sps:$4 sm:$0xff]  }
  0x67   : > { %1767 = vmatpush3.bf16.msra.mxu1 %v1928_v25  ;;  %1273 = vmatprep.subr.bf16.mxu0 %v1910_v23  ;;  %s1652_s17 = sshll.u32 %s2541_s27, 2  ;;  %v1967_v19 = vld [vmem:[%s2333_s14 + $0x260] ss:$12 sps:$4 sm:$0xff]   ;;  %v1964_v22 = vld [vmem:[%s2333_s14 + $0x198] ss:$12 sps:$4 sm:$0xff]   ;;  %s1817_s23 = smul.u32 3, %s2541_s27 }
  0x68   : > { %1768 = vmatprep.subr.bf16.mxu1 %v1931_v27  ;;  %s420_s18 = scalar_lea.vmem %s2521_s2, %s1652_s17  ;;  %v1968_v23 = vld [vmem:[%s2333_s14 + $0x1a0] ss:$12 sps:$4 sm:$0xff]   ;;  %v1972_v27 = vld [vmem:[%s2333_s14 + $0x278] ss:$12 sps:$4 sm:$0xff]   ;;  %s1653_s12 = sshll.u32 %s2541_s27, 3  ;;  %vm1473_vm1 = vcmask 7168  }
  0x69   : > { %v2415_v0 = vld [vmem:[%s420_s18] sm:$0xf]  ;;  %v2002_v61 = vld [vmem:[%s2333_s14 + $0x258] ss:$12 sps:$4 sm:$0xff]   ;;  %s424_s30 = scalar_lea.vmem %s2523_s4, %s1817_s23  ;;  %s428_s9 = scalar_lea.vmem %s2524_s5, %s1817_s23 }
  0x6a   : > { %1274 = vmatpush1.bf16.msra.mxu0 %v1912_v26  ;;  %v455_v2 = vrot.slane %v2415_v0, %v2413_v63  ;;  %v459_v3 = vrot.slane %v2415_v0, %v458_v1  ;;  %v467_v16 = vrot.slane %v2415_v0, %v466_v9  ;;  %v1971_v26 = vld [vmem:[%s2333_s14 + $0x1b4] ss:$12 sps:$4 sm:$0xff]   ;;  %s438_s20 = scalar_lea.vmem %s2526_s7, %s1653_s12 }
  0x6b   : > { %1769 = vmatpush3.bf16.msra.mxu1 %v1933_v29  ;;  %1275 = vmatprep.subr.bf16.mxu0 %v1913_v28  ;;  %v2019_v9 = vld [vmem:[%s2333_s14 + $0x2d4] ss:$12 sps:$4 sm:$0xff]  }
  0x6c   : > { %1770 = vmatprep.subr.bf16.mxu1 %v1936_v31  ;;  %v1973_v31 = vld [vmem:[%s2333_s14 + $0x1b8] ss:$12 sps:$4 sm:$0xff]  }
  0x6e   : > { %1276 = vmatpush1.bf16.msra.mxu0 %v1915_v30  ;;  %v1969_v30 = vld [vmem:[%s2333_s14 + $0x1b0] ss:$12 sps:$4 sm:$0xff]  }
  0x6f   : > { %1771 = vmatpush3.bf16.msra.mxu1 %v1938_v32  ;;  %1277 = vmatprep.subr.bf16.mxu0 %v1916_v33  ;;  %v1976_v33 = vld [vmem:[%s2333_s14 + $0x1cc] ss:$12 sps:$4 sm:$0xff]  }
  0x70   : > { %1772 = vmatprep.subr.bf16.mxu1 %v1941_v35  ;;  %v1974_v35 = vld [vmem:[%s2333_s14 + $0x1c8] ss:$12 sps:$4 sm:$0xff]  }
  0x72   : > { %1278 = vmatpush1.bf16.msra.mxu0 %v1918_v34  ;;  %v1977_v34 = vld [vmem:[%s2333_s14 + $0x290] ss:$12 sps:$4 sm:$0xff]  }
  0x73   : > { %1773 = vmatpush3.bf16.msra.mxu1 %v1943_v37  ;;  %1279 = vmatprep.subr.bf16.mxu0 %v1919_v36  ;;  %v1978_v36 = vld [vmem:[%s2333_s14 + $0x1d0] ss:$12 sps:$4 sm:$0xff]  }
  0x74   : > { %1774 = vmatprep.subr.bf16.mxu1 %v1946_v38  ;;  %v1981_v37 = vld [vmem:[%s2333_s14 + $0x1e4] ss:$12 sps:$4 sm:$0xff]   ;;  %v1982_v38 = vld [vmem:[%s2333_s14 + $0x2a8] ss:$12 sps:$4 sm:$0xff]  }
  0x76   : > { %1280 = vmatpush1.bf16.msra.mxu0 %v1922_v39  ;;  %v2442_v39 = vsub.s32 2, %v2407_v62 }
  0x77   : > { %1775 = vmatpush3.bf16.msra.mxu1 %v1948_v41  ;;  %1281 = vmatprep.subr.bf16.mxu0 %v1924_v40  ;;  %v1979_v40 = vld [vmem:[%s2333_s14 + $0x1e0] ss:$12 sps:$4 sm:$0xff]   ;;  %v1983_v41 = vld [vmem:[%s2333_s14 + $0x1e8] ss:$12 sps:$4 sm:$0xff]  }
  0x78   : > { %1776 = vmatprep.subr.bf16.mxu1 %v1951_v52  ;;  %v1996_v52 = vld [vmem:[%s2333_s14 + $0x22c] ss:$12 sps:$4 sm:$0xff]  }
  0x7a   : > { %1282 = vmatpush1.bf16.msra.mxu0 %v1927_v42  ;;  %v1986_v42 = vld [vmem:[%s2333_s14 + $0x1fc] ss:$12 sps:$4 sm:$0xff]  }
  0x7b   : > { %1283 = vmatprep.subr.bf16.mxu0 %v1929_v43  ;;  %1777 = vmatpush3.bf16.msra.mxu1 %v1953_v54  ;;  %v1987_v43 = vld [vmem:[%s2333_s14 + $0x2c0] ss:$12 sps:$4 sm:$0xff]  }
  0x7c   : > { %1778 = vmatprep.subr.bf16.mxu1 %v1956_v56  ;;  %v1998_v56 = vld [vmem:[%s2333_s14 + $0x230] ss:$12 sps:$4 sm:$0xff]  }
  0x7e   : > { %1284 = vmatpush1.bf16.msra.mxu0 %v1932_v44  ;;  %v463_v44 = vrot.slane %v2415_v0, %v2442_v39  ;;  %v2007_v0 = vld [vmem:[%s2333_s14 + $0x274] ss:$12 sps:$4 sm:$0xff]  }
  0x7f   : > { %1285 = vmatprep.subr.bf16.mxu0 %v1934_v45  ;;  %1779 = vmatpush3.bf16.msra.mxu1 %v1958_v58  ;;  %v1984_v45 = vld [vmem:[%s2333_s14 + $0x1f8] ss:$12 sps:$4 sm:$0xff]  }
  0x80   : > { %1786 = vmatprep.subr.bf16.mxu1 %v1962_v60  ;;  %v2004_v60 = vld [vmem:[%s2333_s14 + $0x25c] ss:$12 sps:$4 sm:$0xff]  }
  0x82   : > { %1286 = vmatpush1.bf16.msra.mxu0 %v1937_v46  ;;  %v1988_v46 = vld [vmem:[%s2333_s14 + $0x200] ss:$12 sps:$4 sm:$0xff]  }
  0x83   : > { %1287 = vmatprep.subr.bf16.mxu0 %v1939_v47  ;;  %v1991_v47 = vld [vmem:[%s2333_s14 + $0x214] ss:$12 sps:$4 sm:$0xff]  }
  0x86   : > { %1288 = vmatpush1.bf16.msra.mxu0 %v1942_v48  ;;  %v1992_v48 = vld [vmem:[%s2333_s14 + $0x2d8] ss:$12 sps:$4 sm:$0xff]  }
  0x87   : > { %1289 = vmatprep.subr.bf16.mxu0 %v1944_v49 }
  0x8a   : > { %1290 = vmatpush1.bf16.msra.mxu0 %v1947_v50  ;;  %v1989_v50 = vld [vmem:[%s2333_s14 + $0x210] ss:$12 sps:$4 sm:$0xff]  }
  0x8b   : > { %1291 = vmatprep.subr.bf16.mxu0 %v1949_v51  ;;  %v1993_v51 = vld [vmem:[%s2333_s14 + $0x218] ss:$12 sps:$4 sm:$0xff]  }
  0x8e   : > { %1292 = vmatpush1.bf16.msra.mxu0 %v1952_v53  ;;  %v1997_v53 = vld [vmem:[%s2333_s14 + $0x2f0] ss:$12 sps:$4 sm:$0xff]  }
  0x8f   : > { %1293 = vmatprep.subr.bf16.mxu0 %v1954_v55  ;;  %v1994_v55 = vld [vmem:[%s2333_s14 + $0x228] ss:$12 sps:$4 sm:$0xff]  }
  0x92   : > { %1294 = vmatpush1.bf16.msra.mxu0 %v1957_v57  ;;  %v2001_v57 = vld [vmem:[%s2333_s14 + $0x244] ss:$12 sps:$4 sm:$0xff]  }
  0x93   : > { %1304 = vmatprep.subr.bf16.mxu0 %v1961_v59  ;;  %v1999_v59 = vld [vmem:[%s2333_s14 + $0x240] ss:$12 sps:$4 sm:$0xff]  }
 0x12d   : > { %v550_v4 = vpop.f32.mrb[0].mxu1 }
 0x12e   : > { %v551_v5 = vadd.f32 %v550_v4, %v455_v2  ;;  %v552_v6 = vpop.f32.mrb[1].mxu1  ;;  %v2005_v2 = vld [vmem:[%s2333_s14 + $0x270] ss:$12 sps:$4 sm:$0xff]   ;;  %v2008_v4 = vld [vmem:[%s2333_s14 + $0x288] ss:$12 sps:$4 sm:$0xff]  }
 0x12f   : > { %v553_v7 = vadd.f32 %v552_v6, %v459_v3  ;;  %v554_v8 = vpop.f32.mrb[2].mxu1  ;;  %v2010_v3 = vld [vmem:[%s2333_s14 + $0x28c] ss:$12 sps:$4 sm:$0xff]  }
 0x130   : > { %v598_v10 = vmax.f32 %v551_v5, 0.0  ;;  %v555_v11 = vpop.f32.mrb[3].mxu1  ;;  %v2013_v5 = vld [vmem:[%s2333_s14 + $0x2a4] ss:$12 sps:$4 sm:$0xff]   ;;  %v2011_v6 = vld [vmem:[%s2333_s14 + $0x2a0] ss:$12 sps:$4 sm:$0xff]  }
 0x131   : > { %v599_v12 = vmax.f32 %v553_v7, 0.0  ;;  %v2016_v7 = vld [vmem:[%s2333_s14 + $0x2bc] ss:$12 sps:$4 sm:$0xff]   ;;  %v2014_v8 = vld [vmem:[%s2333_s14 + $0x2b8] ss:$12 sps:$4 sm:$0xff]  }
 0x132   : > { %v602_v17 = vpack.c.bf16 %v598_v10, %v598_v10  ;;  %v2017_v10 = vld [vmem:[%s2333_s14 + $0x2d0] ss:$12 sps:$4 sm:$0xff]   ;;  %v2022_v11 = vld [vmem:[%s2333_s14 + $0x2ec] ss:$12 sps:$4 sm:$0xff]  }
 0x133   : > { %v603_v13 = vpack.c.bf16 %v599_v12, %v599_v12  ;;  %v2020_v12 = vld [vmem:[%s2333_s14 + $0x2e8] ss:$12 sps:$4 sm:$0xff]   ;;  %s431_s14 = scalar_lea.vmem %s2525_s6, %s2541_s27 }
 0x135   : > { %1295 = vmatprep.mubr.bf16.mxu0 %v603_v13  ;;  %1377 = vmatprep.mubr.bf16.mxu1 %v603_v13  ;;  %v591_v20 = vpop.f32.mrb[4].mxu1 }
 0x136   : > { %1296 = vmatmul.mubr.bf16.vlgmr.msra.gmra.mrb[0].mxu0 %v602_v17  ;;  %1378 = vmatmul.mubr.bf16.vlgmr.msra.gmra.mrb[8].mxu1 %v602_v17  ;;  %v593_v21 = vpop.f32.mrb[5].mxu1  ;;  %v592_v49 = vadd.f32 %v591_v20, %v463_v44 }
 0x137   : > { %1305 = vmatpush1.bf16.msra.mxu0 %v1959_v14  ;;  %1787 = vmatpush3.bf16.msra.mxu1 %v1963_v15  ;;  %v594_v24 = vadd.f32 %v593_v21, %v467_v16  ;;  %v595_v25 = vpop.f32.mrb[6].mxu1 }
 0x138   : > { %1306 = vmatprep.subr.bf16.mxu0 %v1966_v18  ;;  %1788 = vmatprep.subr.bf16.mxu1 %v1967_v19  ;;  %v596_v28 = vpop.f32.mrb[7].mxu1  ;;  %v600_v54 = vmax.f32 %v592_v49, 0.0  ;;  %v734_v18 = vld [vmem:[%s424_s30] sm:$0x7] }
 0x139   : > { %v601_v29 = vmax.f32 %v594_v24, 0.0  ;;  %v747_v19 = vrot.slane %v734_v18, %v2442_v39 }
 0x13a   : > { %v604_v58 = vpack.c.bf16 %v600_v54, %v600_v54 }
 0x13b   : > { %1307 = vmatpush1.bf16.msra.mxu0 %v1964_v22  ;;  %1789 = vmatpush3.bf16.msra.mxu1 %v1968_v23  ;;  %v605_v32 = vpack.c.bf16 %v601_v29, %v601_v29  ;;  %v1441_v29 = vsub.s32 4, %v2407_v62 }
 0x13c   : > { %1308 = vmatprep.subr.bf16.mxu0 %v1971_v26  ;;  %1790 = vmatprep.subr.bf16.mxu1 %v1972_v27  ;;  %v1428_v27 = vld [vmem:[%s428_s9] sm:$0x7] }
 0x13d   : > { %1417 = vmatprep.mubr.bf16.mxu1 %v605_v32  ;;  %1336 = vmatprep.mubr.bf16.mxu0 %v605_v32  ;;  %v1429_v28 = vunpack.c.l.bf16 %v1428_v27  ;;  %v743_v32 = vrot.slane %v734_v18, %v458_v1 }
 0x13f   : > { %1309 = vmatpush1.bf16.msra.mxu0 %v1969_v30  ;;  %1791 = vmatpush3.bf16.msra.mxu1 %v1973_v31  ;;  %v739_v30 = vrot.slane %v734_v18, %v2413_v63  ;;  %v1434_v31 = vrot.slane %v1429_v28, %v2413_v63 }
 0x140   : > { %1310 = vmatprep.subr.bf16.mxu0 %v1976_v33  ;;  %1792 = vmatprep.subr.bf16.mxu1 %v1977_v34  ;;  %v1438_v33 = vrot.slane %v1429_v28, %v2442_v39 }
 0x143   : > { %1311 = vmatpush1.bf16.msra.mxu0 %v1974_v35  ;;  %1793 = vmatpush3.bf16.msra.mxu1 %v1978_v36  ;;  %v1442_v35 = vrot.slane %v1429_v28, %v1441_v29 }
 0x144   : > { %1312 = vmatprep.subr.bf16.mxu0 %v1981_v37  ;;  %1794 = vmatprep.subr.bf16.mxu1 %v1982_v38  ;;  %v1449_v37 = vrot.slane %v1434_v31, %v2413_v63 }
 0x145   : > { %v1457_v62 = vrot.slane %v1442_v35, %v2413_v63 }
 0x147   : > { %1313 = vmatpush1.bf16.msra.mxu0 %v1979_v40  ;;  %1795 = vmatpush3.bf16.msra.mxu1 %v1983_v41  ;;  %v1453_v41 = vrot.slane %v1438_v33, %v2413_v63 }
 0x148   : > { %1314 = vmatprep.subr.bf16.mxu0 %v1986_v42  ;;  %1796 = vmatprep.subr.bf16.mxu1 %v1987_v43 }
 0x14b   : > { %1315 = vmatpush1.bf16.msra.mxu0 %v1984_v45  ;;  %1797 = vmatpush3.bf16.msra.mxu1 %v1988_v46 }
 0x14c   : > { %1316 = vmatprep.subr.bf16.mxu0 %v1991_v47  ;;  %1798 = vmatprep.subr.bf16.mxu1 %v1992_v48 }
 0x14f   : > { %1317 = vmatpush1.bf16.msra.mxu0 %v1989_v50  ;;  %1799 = vmatpush3.bf16.msra.mxu1 %v1993_v51  ;;  %v1760_v50 = vld [vmem:[%s431_s14] ss:$0 sm:$0xff] }
 0x150   : > { %1318 = vmatprep.subr.bf16.mxu0 %v1996_v52  ;;  %1800 = vmatprep.subr.bf16.mxu1 %v1997_v53 }
 0x153   : > { %1319 = vmatpush1.bf16.msra.mxu0 %v1994_v55  ;;  %1801 = vmatpush3.bf16.msra.mxu1 %v1998_v56 }
 0x154   : > { %1320 = vmatprep.subr.bf16.mxu0 %v2001_v57 }
 0x156   : > { %1418 = vmatmul.mubr.bf16.vlgmr.msra.gmra.mrb[12].mxu1 %v604_v58 }
 0x157   : > { %1321 = vmatpush1.bf16.msra.mxu0 %v1999_v59 }
 0x158   : > { %1322 = vmatprep.subr.bf16.mxu0 %v2004_v60 }
 0x15b   : > { %1323 = vmatpush1.bf16.msra.mxu0 %v2002_v61 }
 0x15c   : > { %1324 = vmatprep.subr.bf16.mxu0 %v2007_v0 }
 0x15f   : > { %1325 = vmatpush1.bf16.msra.mxu0 %v2005_v2 }
 0x160   : > { %1326 = vmatprep.subr.bf16.mxu0 %v2010_v3 }
 0x163   : > { %1327 = vmatpush1.bf16.msra.mxu0 %v2008_v4 }
 0x164   : > { %1328 = vmatprep.subr.bf16.mxu0 %v2013_v5 }
 0x167   : > { %1329 = vmatpush1.bf16.msra.mxu0 %v2011_v6 }
 0x168   : > { %1330 = vmatprep.subr.bf16.mxu0 %v2016_v7 }
 0x16b   : > { %1331 = vmatpush1.bf16.msra.mxu0 %v2014_v8 }
 0x16c   : > { %1332 = vmatprep.subr.bf16.mxu0 %v2019_v9 }
 0x16f   : > { %1333 = vmatpush1.bf16.msra.mxu0 %v2017_v10 }
 0x170   : > { %1334 = vmatprep.subr.bf16.mxu0 %v2022_v11 }
 0x173   : > { %1335 = vmatpush1.bf16.msra.mxu0 %v2020_v12 }
 0x176   : > { %1337 = vmatmul.mubr.bf16.vlgmr.msra.gmra.mrb[0].mxu0 %v604_v58 }
 0x209   : > { %v1780_v13 = vpop.f32.mrb[8].mxu1 }
 0x20a   : > { %v1781_v14 = vpop.f32.mrb[9].mxu1 }
 0x20b   : > { %v1782_v15 = vadd.f32 %v1781_v14, %v1780_v13  ;;  %v1783_v16 = vpop.f32.mrb[10].mxu1 }
 0x20c   : > { %v1784_v17 = vpop.f32.mrb[11].mxu1 }
 0x20d   : > { %v1380_v22 = vadd.f32 %v1782_v15, %v747_v19 }
 0x229   : > { %v1802_v20 = vpop.f32.mrb[12].mxu1 }
 0x22a   : > { %v1803_v21 = vpop.f32.mrb[13].mxu1 }
 0x22b   : > { %v1804_v23 = vadd.f32 %v1803_v21, %v1802_v20  ;;  %v1805_v24 = vpop.f32.mrb[14].mxu1 }
 0x22c   : > { %v1806_v25 = vpop.f32.mrb[15].mxu1 }
 0x22d   : > { %v1420_v26 = vadd.f32 %v1804_v23, %v1380_v22 }
 0x22f   : > { %v1427_v45 = vmax.f32 %v1420_v26, 0.0 }
 0x231   : > { %v1460_v47 = vmul.f32 %v1457_v62, %v1427_v45 }
 0x249   : > { %v1338_v34 = vpop.f32.mrb[0].mxu0 }
 0x24a   : > { %v1808_v36 = vadd.f32 %v1338_v34, %v739_v30  ;;  %v1340_v38 = vpop.f32.mrb[1].mxu0 }
 0x24b   : > { %v1809_v40 = vadd.f32 %v1340_v38, %v743_v32  ;;  %v1342_v42 = vpop.f32.mrb[2].mxu0 }
 0x24c   : > { %v1425_v43 = vmax.f32 %v1808_v36, 0.0  ;;  %v1343_v44 = vpop.f32.mrb[3].mxu0 }
 0x24d   : > { %v1426_v46 = vmax.f32 %v1809_v40, 0.0 }
 0x24e   : > { %v1458_v1 = vmul.f32 %v1449_v37, %v1425_v43 }
 0x24f   : > { %v1459_v39 = vmul.f32 %v1453_v41, %v1426_v46 }
 0x251   : > { %v1461_v48 = vadd.f32 %v1459_v39, %v1458_v1 }
 0x253   : > { %v1462_v49 = vadd.f32 %v1461_v48, %v1460_v47 }
 0x255   : > { %1463 = vadd.xlane.f32.xlu0 %v1462_v49 }
 0x2e2   : > { %v1464_v51 = vpop.xlane.xlu0 %1463 }
 0x2e3   : > { %v1472_v52 = vadd.f32 %v1760_v50, %v1464_v51 }
 0x2e5   : > { %1474 = vst.msk [vmem:[%s438_s20] sm:$0xff] %vm1473_vm1, %v1472_v52 }
 0x2e6 PF: > { %s23_s29 = sadd.s32 1, %s2137_s29   ;;  %s2533_s24 = smov %s2121_s25 }
 0x2e7   : > { %p20_p11 = scmp.ge.s32.totalorder %s23_s29, 4   ;;  %s2534_s25 = smov %s2125_s26 }
 0x2e8   : > { %s2535_s26 = smov %s2235_s13  ;;  %s2536_s27 = smov %s2133_s28 }
 0x2e9   : > { %s2537_s28 = smov %s2539_s8  ;;  %22 = sbr.rel (!%p20_p11) target bundleno = 6 (0x6), region = 116 }
 0x2f0   :  { %1500 = vsyncpa [#allocation3], 1 }
 0x2f1   :  { %1502 = vsyncpa [#allocation3 + $0x1], 1 }
 0x2f2   :  { %1503 = vsyncpa [#allocation5], 1 }
 0x2f3   :  { %1505 = vsyncpa [#allocation5 + $0x1], 1 }

</bundles_post_ra>
